<compile_context>
chip_gen: v7x
topology: tpu7x:2x2x1
jax: 0.10.0
libtpu: 0.0.40
codegen_flags: <defaults>
</compile_context>

<pallas_src>
import jax
import jax.numpy as jnp
from jax.experimental import pallas as pl
from jax.experimental.pallas import tpu as pltpu

CONTEXT_FRAMES = 10
FEAT = 48
HIDDEN = FEAT * CONTEXT_FRAMES       # 480 (not lane-aligned)
HIDDEN_PAD = 512                     # 4 x 128 lanes: lane-dense K and N


def _round_up(x, m):
    return ((x + m - 1) // m) * m


def _mlp_kernel(x_ref, w_ref, b_ref, o_ref):
    # x_ref: (TM, 512) bf16, w_ref: (512, 512) bf16 laid out (in, out),
    # b_ref: (1, 512) f32, o_ref: (TM, 512) f32.
    y = jnp.dot(x_ref[...], w_ref[...], preferred_element_type=jnp.float32)
    o_ref[...] = jnp.tanh(y + b_ref[...]).astype(o_ref.dtype)


def prepare_params(W, b):
    """One-time parameter prep (hoisted out of the per-call path).

    W: (out=480, in=480) float32 as stored by nn.Linear; b: (480,) float32.
    Returns (w_pad, b_pad): (512, 512) bf16 in (in, out) layout and (1, 512) f32.
    """
    w_t = W.T.astype(jnp.bfloat16)                                   # (in, out)
    w_pad = jnp.zeros((HIDDEN_PAD, HIDDEN_PAD), jnp.bfloat16)
    w_pad = w_pad.at[:HIDDEN, :HIDDEN].set(w_t)
    b_pad = jnp.zeros((1, HIDDEN_PAD), jnp.float32)
    b_pad = b_pad.at[:, :HIDDEN].set(b.astype(jnp.float32))
    return w_pad, b_pad


def simple_mlp_forward(tactiles, actions, w_pad, b_pad):
    """tactiles: [T, B, 48] float32; actions unused (matches the PyTorch module).

    w_pad / b_pad come from prepare_params() (already transposed/padded/bf16).
    """
    del actions  # unused in the reference forward

    # --- glue (plain JAX): slice context frames, permute, flatten ---
    tactile = tactiles[:CONTEXT_FRAMES]                  # [10, B, 48]
    tactile = jnp.transpose(tactile, (1, 0, 2))          # [B, 10, 48]
    x = tactile.reshape(tactile.shape[0], -1)            # [B, 480]
    B = x.shape[0]

    # Batch tile: sublane-aligned, up to 256 rows per grid step.
    TM = _round_up(B, 8) if B <= 256 else 256
    B_pad = _round_up(B, TM)
    num_tiles = B_pad // TM

    # Zero-pad activations to (B_pad, 512) and cast to bf16 for the MXU.
    x_pad = jnp.zeros((B_pad, HIDDEN_PAD), jnp.bfloat16)
    x_pad = x_pad.at[:B, :HIDDEN].set(x.astype(jnp.bfloat16))

    cost = pl.CostEstimate(
        flops=2 * B_pad * HIDDEN_PAD * HIDDEN_PAD,
        transcendentals=B_pad * HIDDEN_PAD,
        bytes_accessed=(HIDDEN_PAD * HIDDEN_PAD * 2        # weight (bf16)
                        + B_pad * HIDDEN_PAD * 2           # x (bf16)
                        + HIDDEN_PAD * 4                   # bias (f32)
                        + B_pad * HIDDEN_PAD * 4),         # out (f32)
    )

    out_pad = pl.pallas_call(
        _mlp_kernel,
        out_shape=jax.ShapeDtypeStruct((B_pad, HIDDEN_PAD), jnp.float32),
        grid=(num_tiles,),
        in_specs=[
            pl.BlockSpec((TM, HIDDEN_PAD), lambda i: (i, 0)),           # x tile
            pl.BlockSpec((HIDDEN_PAD, HIDDEN_PAD), lambda i: (0, 0)),   # weight (resident)
            pl.BlockSpec((1, HIDDEN_PAD), lambda i: (0, 0)),            # bias (resident)
        ],
        out_specs=pl.BlockSpec((TM, HIDDEN_PAD), lambda i: (i, 0)),
        compiler_params=pltpu.CompilerParams(
            dimension_semantics=("parallel",),
        ),
        cost_estimate=cost,
    )(x_pad, w_pad, b_pad)

    # Slice back to the logical (B, 480) output.
    return out_pad[:B, :HIDDEN]


if __name__ == "__main__":
    key = jax.random.PRNGKey(0)
    k_w, k_b, k_t, k_a = jax.random.split(key, 4)

    # Deterministic parameter init (mimic nn.Linear default: U(-1/sqrt(in), 1/sqrt(in)))
    bound = 1.0 / (HIDDEN ** 0.5)
    W = jax.random.uniform(k_w, (HIDDEN, HIDDEN), jnp.float32, -bound, bound)  # (out, in)
    b = jax.random.uniform(k_b, (HIDDEN,), jnp.float32, -bound, bound)

    # One-time parameter prep (transposed / padded / bf16) — hoisted out of the call path.
    w_pad, b_pad = prepare_params(W, b)

    # Small example inputs: T=12 frames (>= context_frames), batch=2, feat=48.
    T, B = 12, 2
    tactiles = jax.random.normal(k_t, (T, B, FEAT), jnp.float32)
    actions = jax.random.normal(k_a, (T, B, 6), jnp.float32)  # unused, as in the module

    out = simple_mlp_forward(tactiles, actions, w_pad, b_pad)
    out = jax.block_until_ready(out)

    # Reference check in plain JAX (f32).  bf16 operands with f32 accumulation
    # -> loosen tolerance vs. the pure-f32 reference.
    ref_x = jnp.transpose(tactiles[:CONTEXT_FRAMES], (1, 0, 2)).reshape(B, -1)
    ref = jnp.tanh(ref_x @ W.T + b)
    assert out.shape == (B, HIDDEN)
    assert jnp.allclose(out, ref, atol=2e-2, rtol=0.0), float(jnp.max(jnp.abs(out - ref)))

    print("KERNEL_OK")
</pallas_src>

<mosaic_0001>
module attributes {stable_mosaic.version = 11 : i64} {
  func.func @_mlp_kernel(%arg0: i32, %arg1: memref<8x512xbf16, #tpu.memory_space<vmem>>, %arg2: memref<512x512xbf16, #tpu.memory_space<vmem>>, %arg3: memref<1x512xf32, #tpu.memory_space<vmem>>, %arg4: memref<8x512xf32, #tpu.memory_space<vmem>>) attributes {dimension_semantics = [#tpu.dimension_semantics<parallel>], iteration_bounds = array<i64: 1>, scalar_prefetch = 0 : i64, scratch_operands = 0 : i64, tpu.core_type = #tpu.core_type<tc>, window_params = [{transform_indices = @transform_0, window_bounds = array<i64: 8, 512>}, {pipeline_mode = #tpu.pipeline_mode<synchronous>, transform_indices = @transform_1, window_bounds = array<i64: 512, 512>}, {pipeline_mode = #tpu.pipeline_mode<synchronous>, transform_indices = @transform_2, window_bounds = array<i64: 1, 512>}, {transform_indices = @transform_3, window_bounds = array<i64: 8, 512>}]} {
    %c0 = arith.constant 0 : index
    %c0_0 = arith.constant 0 : index
    %0 = vector.load %arg1[%c0, %c0_0] : memref<8x512xbf16, #tpu.memory_space<vmem>>, vector<8x512xbf16>
    %c0_1 = arith.constant 0 : index
    %c0_2 = arith.constant 0 : index
    %1 = vector.load %arg2[%c0_1, %c0_2] : memref<512x512xbf16, #tpu.memory_space<vmem>>, vector<512x512xbf16>
    %cst = arith.constant dense<0.000000e+00> : vector<8x512xf32>
    %2 = tpu.matmul %0, %1, %cst {dimension_numbers = #tpu.dot_dimension_numbers<[1], [0], [0], [1], [0, 0, 1, 1], [], []>} : vector<8x512xbf16>, vector<512x512xbf16>, vector<8x512xf32> -> vector<8x512xf32>
    %c0_3 = arith.constant 0 : index
    %c0_4 = arith.constant 0 : index
    %3 = vector.load %arg3[%c0_3, %c0_4] : memref<1x512xf32, #tpu.memory_space<vmem>>, vector<1x512xf32>
    %4 = vector.broadcast %3 : vector<1x512xf32> to vector<8x512xf32>
    %5 = arith.addf %2, %4 : vector<8x512xf32>
    %6 = math.tanh %5 : vector<8x512xf32>
    %c0_5 = arith.constant 0 : index
    %c0_6 = arith.constant 0 : index
    %7 = vector.load %arg4[%c0_5, %c0_6] : memref<8x512xf32, #tpu.memory_space<vmem>>, vector<8x512xf32>
    tpu.vector_store %arg4[%c0_5, %c0_6], %6 {strides = array<i32>} : memref<8x512xf32, #tpu.memory_space<vmem>>, vector<8x512xf32>,
    return
  }
  func.func @transform_0(%arg0: i32) -> (i32, i32) {
    %c0_i32 = arith.constant 0 : i32
    %c0_i32_0 = arith.constant 0 : i32
    return %arg0, %c0_i32 : i32, i32
  }
  func.func @transform_1(%arg0: i32) -> (i32, i32) {
    %c0_i32 = arith.constant 0 : i32
    %c0_i32_0 = arith.constant 0 : i32
    %c0_i32_1 = arith.constant 0 : i32
    return %c0_i32, %c0_i32_0 : i32, i32
  }
  func.func @transform_2(%arg0: i32) -> (i32, i32) {
    %c0_i32 = arith.constant 0 : i32
    %c0_i32_0 = arith.constant 0 : i32
    %c0_i32_1 = arith.constant 0 : i32
    return %c0_i32, %c0_i32_0 : i32, i32
  }
  func.func @transform_3(%arg0: i32) -> (i32, i32) {
    %c0_i32 = arith.constant 0 : i32
    %c0_i32_0 = arith.constant 0 : i32
    return %arg0, %c0_i32 : i32, i32
  }
}

</mosaic_0001>

<bundles_post_ra>
// kernel: tpu_custom_call.1
= control target key start
LH: loop header
LB: loop body
LE: loop exit
PB: predicated region body
PF: predicated region fallthrough
CT: control target
= control target key end

     0   :  { %8 = vsyncpa [#allocation3], 0  ;;  %s1537_s0 = inlined_call_operand.hbm [shape: bf16[8,512], index: 0, kind: input, shape index: {}]   ;;  %s1538_s1 = inlined_call_operand.hbm [shape: bf16[512,512], index: 1, kind: input, shape index: {}]   ;;  %s1539_s2 = inlined_call_operand.vmem [shape: f32[1,512], index: 2, kind: input, shape index: {}]   ;;  %s1540_s3 = inlined_call_operand.hbm [shape: f32[8,512], index: 3, kind: output, shape index: {}]  }
   0x1   :  { %9 = vsyncpa [#allocation6], 0 }
   0x2   :  { %10 = vsyncpa [#allocation4], 0  ;;  %s1460_s12 = smov [#allocation2]   ;;  %s1461_s14 = smov [#allocation5]  }
   0x3   :  { %s17_s13 = sshll.u32 %s1460_s12, 4  ;;  %s26_s15 = sshll.u32 %s1461_s14, 4  ;;  %s18_s13 = int_to_ptr.vmem [resolvable:$true] %s17_s13  ;;  %s1485_s15 = int_to_ptr.vmem [resolvable:$true] %s26_s15 }
   0x4   :  { %s1388_s18 = scalar_lea.hbm %s1537_s0, 256 }
   0x5   :  { %p1389_p0 = scmp.ne.s32.totalorder %s1537_s0, %s1388_s18  ;;  %p1392_p1 = scmp.lt.u32.totalorder %s1388_s18, %s1537_s0 }
   0x7   :  { %p1394_p2 = pnand %p1392_p1, %p1389_p0 }
   0x9   :  { %1397 = shalt.err (!%p1394_p2)
}
   0xa   :  { %s1398_s23 = scalar_lea.vmem %s18_s13, 256  ;;  %p1403_p4 = scmp.lt.s32.totalorder %s18_s13, %s18_s13 }
   0xb   :  { %p1399_p3 = scmp.ne.s32.totalorder %s18_s13, %s1398_s23  ;;  %p1404_p5 = scmp.lt.s32.totalorder %s1398_s23, %s1398_s23 }
   0xd   :  { %p1405_p6 = por %p1404_p5, %p1403_p4 }
   0xf   :  { %p1406_p7 = pnand %p1405_p6, %p1399_p3 }
  0x11   :  { %1409 = shalt.err (!%p1406_p7)
}
  0x12   :  { %20 = dma.hbm_to_vmem [thread:$0]  %s1537_s0, 256, %s18_s13, [#allocation3]  }
  0x13   :  { %s1410_s28 = scalar_lea.hbm %s1538_s1, 16384 }
  0x14   :  { %p1411_p8 = scmp.ne.s32.totalorder %s1538_s1, %s1410_s28  ;;  %p1414_p9 = scmp.lt.u32.totalorder %s1410_s28, %s1538_s1 }
  0x16   :  { %p1416_p10 = pnand %p1414_p9, %p1411_p8 }
  0x18   :  { %1419 = shalt.err (!%p1416_p10)
}
  0x19   :  { %s1420_s6 = scalar_lea.vmem %s1485_s15, 16384  ;;  %p1425_p12 = scmp.lt.s32.totalorder %s1485_s15, %s1485_s15 }
  0x1a   :  { %p1421_p11 = scmp.ne.s32.totalorder %s1485_s15, %s1420_s6  ;;  %p1426_p13 = scmp.lt.s32.totalorder %s1420_s6, %s1420_s6 }
  0x1c   :  { %p1427_p0 = por %p1426_p13, %p1425_p12 }
  0x1e   :  { %p1428_p1 = pnand %p1427_p0, %p1421_p11 }
  0x20   :  { %1431 = shalt.err (!%p1428_p1)
}
  0x21   :  { %s1462_s0 = smov 256   ;;  %s1463_s7 = smov 16  }
  0x22   :  { %32 = dma.hbm_to_vmem [thread:$0]  %s1538_s1, 16384, %s1485_s15, [#allocation6], %s1462_s0, %s1462_s0, %s1463_s7  }
  0x23   :  { %1454 = dma.done.wait [#allocation3], 256  }
  0x24   :  { %1455 = vsyncadd [#allocation3], 4294967040 }
  0x25   :  { %1456 = dma.done.wait [#allocation6], 16384  }
  0x26   :  { %1457 = vsyncadd [#allocation6], 4294950912  ;;  %v1184_v0 = vld [vmem:[#allocation5 + $0x4] ss:$16 sps:$4 sm:$0xff]   ;;  %v1186_v1 = vld [vmem:[#allocation5 + $0xc] ss:$16 sps:$4 sm:$0xff]  }
  0x27   :  { %847 = vmatprep.subr.bf16.mxu0 %v1184_v0  ;;  %v1188_v2 = vld [vmem:[#allocation5] ss:$16 sps:$4 sm:$0xff]   ;;  %v1189_v3 = vld [vmem:[#allocation5 + $0x8] ss:$16 sps:$4 sm:$0xff]   ;;  %929 = vmatprep.subr.bf16.mxu1 %v1186_v1  ;;  %v1190_v4 = vld [vmem:[#allocation5 + $0x24] ss:$16 sps:$4 sm:$0xff]  }
  0x28   :  { %848 = vmatpush1.bf16.msra.mxu0 %v1188_v2  ;;  %930 = vmatpush1.bf16.msra.mxu1 %v1189_v3  ;;  %v1192_v5 = vld [vmem:[#allocation5 + $0x2c] ss:$16 sps:$4 sm:$0xff]   ;;  %v1194_v6 = vld [vmem:[#allocation5 + $0x20] ss:$16 sps:$4 sm:$0xff]   ;;  %v1195_v7 = vld [vmem:[#allocation5 + $0x28] ss:$16 sps:$4 sm:$0xff]  }
  0x29   :  { %849 = vmatprep.subr.bf16.mxu0 %v1190_v4  ;;  %931 = vmatprep.subr.bf16.mxu1 %v1192_v5  ;;  %v1196_v8 = vld [vmem:[#allocation5 + $0x44] ss:$16 sps:$4 sm:$0xff]   ;;  %v1198_v9 = vld [vmem:[#allocation5 + $0x4c] ss:$16 sps:$4 sm:$0xff]   ;;  %v1200_v10 = vld [vmem:[#allocation5 + $0x40] ss:$16 sps:$4 sm:$0xff]  }
  0x2a   :  { %v1201_v11 = vld [vmem:[#allocation5 + $0x48] ss:$16 sps:$4 sm:$0xff]   ;;  %v1202_v12 = vld [vmem:[#allocation5 + $0x64] ss:$16 sps:$4 sm:$0xff]   ;;  %v1204_v13 = vld [vmem:[#allocation5 + $0x6c] ss:$16 sps:$4 sm:$0xff]  }
  0x2b   :  { %v1206_v14 = vld [vmem:[#allocation5 + $0x60] ss:$16 sps:$4 sm:$0xff]   ;;  %v1207_v15 = vld [vmem:[#allocation5 + $0x68] ss:$16 sps:$4 sm:$0xff]   ;;  %v1208_v16 = vld [vmem:[#allocation5 + $0x84] ss:$16 sps:$4 sm:$0xff]  }
  0x2c   :  { %850 = vmatpush1.bf16.msra.mxu0 %v1194_v6  ;;  %932 = vmatpush1.bf16.msra.mxu1 %v1195_v7  ;;  %v1210_v17 = vld [vmem:[#allocation5 + $0x8c] ss:$16 sps:$4 sm:$0xff]   ;;  %v1212_v18 = vld [vmem:[#allocation5 + $0x80] ss:$16 sps:$4 sm:$0xff]   ;;  %v1213_v19 = vld [vmem:[#allocation5 + $0x88] ss:$16 sps:$4 sm:$0xff]  }
  0x2d   :  { %851 = vmatprep.subr.bf16.mxu0 %v1196_v8  ;;  %933 = vmatprep.subr.bf16.mxu1 %v1198_v9  ;;  %v1214_v20 = vld [vmem:[#allocation5 + $0xa4] ss:$16 sps:$4 sm:$0xff]   ;;  %v1216_v21 = vld [vmem:[#allocation5 + $0xac] ss:$16 sps:$4 sm:$0xff]   ;;  %v1218_v22 = vld [vmem:[#allocation5 + $0xa0] ss:$16 sps:$4 sm:$0xff]  }
  0x2e   :  { %v1219_v23 = vld [vmem:[#allocation5 + $0xa8] ss:$16 sps:$4 sm:$0xff]   ;;  %v1220_v24 = vld [vmem:[#allocation5 + $0xc4] ss:$16 sps:$4 sm:$0xff]   ;;  %v1222_v25 = vld [vmem:[#allocation5 + $0xcc] ss:$16 sps:$4 sm:$0xff]  }
  0x2f   :  { %v1224_v26 = vld [vmem:[#allocation5 + $0xc0] ss:$16 sps:$4 sm:$0xff]   ;;  %v1225_v27 = vld [vmem:[#allocation5 + $0xc8] ss:$16 sps:$4 sm:$0xff]   ;;  %v1226_v28 = vld [vmem:[#allocation5 + $0xe4] ss:$16 sps:$4 sm:$0xff]  }
  0x30   :  { %852 = vmatpush1.bf16.msra.mxu0 %v1200_v10  ;;  %934 = vmatpush1.bf16.msra.mxu1 %v1201_v11  ;;  %v1228_v29 = vld [vmem:[#allocation5 + $0xec] ss:$16 sps:$4 sm:$0xff]   ;;  %v1230_v30 = vld [vmem:[#allocation5 + $0xe0] ss:$16 sps:$4 sm:$0xff]   ;;  %v1231_v31 = vld [vmem:[#allocation5 + $0xe8] ss:$16 sps:$4 sm:$0xff]  }
  0x31   :  { %853 = vmatprep.subr.bf16.mxu0 %v1202_v12  ;;  %935 = vmatprep.subr.bf16.mxu1 %v1204_v13  ;;  %v1232_v32 = vld [vmem:[#allocation5 + $0x104] ss:$16 sps:$4 sm:$0xff]   ;;  %v1234_v33 = vld [vmem:[#allocation5 + $0x10c] ss:$16 sps:$4 sm:$0xff]   ;;  %v1236_v34 = vld [vmem:[#allocation5 + $0x100] ss:$16 sps:$4 sm:$0xff]  }
  0x32   :  { %v1237_v35 = vld [vmem:[#allocation5 + $0x108] ss:$16 sps:$4 sm:$0xff]   ;;  %v1238_v36 = vld [vmem:[#allocation5 + $0x124] ss:$16 sps:$4 sm:$0xff]   ;;  %v1240_v37 = vld [vmem:[#allocation5 + $0x12c] ss:$16 sps:$4 sm:$0xff]  }
  0x33   :  { %v1242_v38 = vld [vmem:[#allocation5 + $0x120] ss:$16 sps:$4 sm:$0xff]   ;;  %v1243_v39 = vld [vmem:[#allocation5 + $0x128] ss:$16 sps:$4 sm:$0xff]   ;;  %v1244_v40 = vld [vmem:[#allocation5 + $0x144] ss:$16 sps:$4 sm:$0xff]  }
  0x34   :  { %854 = vmatpush1.bf16.msra.mxu0 %v1206_v14  ;;  %936 = vmatpush1.bf16.msra.mxu1 %v1207_v15  ;;  %v1246_v41 = vld [vmem:[#allocation5 + $0x14c] ss:$16 sps:$4 sm:$0xff]   ;;  %v1248_v42 = vld [vmem:[#allocation5 + $0x140] ss:$16 sps:$4 sm:$0xff]   ;;  %v1249_v43 = vld [vmem:[#allocation5 + $0x148] ss:$16 sps:$4 sm:$0xff]  }
  0x35   :  { %855 = vmatprep.subr.bf16.mxu0 %v1208_v16  ;;  %937 = vmatprep.subr.bf16.mxu1 %v1210_v17  ;;  %v1250_v44 = vld [vmem:[#allocation5 + $0x164] ss:$16 sps:$4 sm:$0xff]   ;;  %v1252_v45 = vld [vmem:[#allocation5 + $0x16c] ss:$16 sps:$4 sm:$0xff]   ;;  %v1254_v47 = vld [vmem:[#allocation5 + $0x160] ss:$16 sps:$4 sm:$0xff]  }
  0x36   :  { %v41_v46 = vld [vmem:[#allocation2] sm:$0xff]  ;;  %v1255_v49 = vld [vmem:[#allocation5 + $0x168] ss:$16 sps:$4 sm:$0xff]   ;;  %v1258_v51 = vld [vmem:[#allocation5 + $0x18c] ss:$16 sps:$4 sm:$0xff]  }
  0x37   :  { %v1036_v48 = vcombine.high %v41_v46, %v41_v46  ;;  %v1256_v50 = vld [vmem:[#allocation5 + $0x184] ss:$16 sps:$4 sm:$0xff]   ;;  %v1260_v52 = vld [vmem:[#allocation5 + $0x180] ss:$16 sps:$4 sm:$0xff]   ;;  %v1261_v53 = vld [vmem:[#allocation5 + $0x188] ss:$16 sps:$4 sm:$0xff]   ;;  %v1035_v4 = vcombine.low %v41_v46, %v41_v46 }
  0x38   :  { %856 = vmatpush1.bf16.msra.mxu0 %v1212_v18  ;;  %938 = vmatpush1.bf16.msra.mxu1 %v1213_v19  ;;  %v1262_v54 = vld [vmem:[#allocation5 + $0x1a4] ss:$16 sps:$4 sm:$0xff]   ;;  %v1264_v55 = vld [vmem:[#allocation5 + $0x1ac] ss:$16 sps:$4 sm:$0xff]   ;;  %v1266_v56 = vld [vmem:[#allocation5 + $0x1a0] ss:$16 sps:$4 sm:$0xff]  }
  0x39   :  { %857 = vmatprep.subr.bf16.mxu0 %v1214_v20  ;;  %939 = vmatprep.subr.bf16.mxu1 %v1216_v21  ;;  %v1267_v57 = vld [vmem:[#allocation5 + $0x1a8] ss:$16 sps:$4 sm:$0xff]   ;;  %v1268_v58 = vld [vmem:[#allocation5 + $0x1c4] ss:$16 sps:$4 sm:$0xff]   ;;  %v1270_v59 = vld [vmem:[#allocation5 + $0x1cc] ss:$16 sps:$4 sm:$0xff]  }
  0x3a   :  { %879 = vmatprep.mubr.bf16.mxu0 %v1036_v48  ;;  %961 = vmatprep.mubr.bf16.mxu1 %v1036_v48  ;;  %v1272_v60 = vld [vmem:[#allocation5 + $0x1c0] ss:$16 sps:$4 sm:$0xff]   ;;  %v1273_v61 = vld [vmem:[#allocation5 + $0x1c8] ss:$16 sps:$4 sm:$0xff]   ;;  %v1274_v62 = vld [vmem:[#allocation5 + $0x1e4] ss:$16 sps:$4 sm:$0xff]  }
  0x3b   :  { %v1276_v63 = vld [vmem:[#allocation5 + $0x1ec] ss:$16 sps:$4 sm:$0xff]   ;;  %v1278_v0 = vld [vmem:[#allocation5 + $0x1e0] ss:$16 sps:$4 sm:$0xff]   ;;  %v1279_v1 = vld [vmem:[#allocation5 + $0x1e8] ss:$16 sps:$4 sm:$0xff]  }
  0x3c   :  { %858 = vmatpush1.bf16.msra.mxu0 %v1218_v22  ;;  %940 = vmatpush1.bf16.msra.mxu1 %v1219_v23  ;;  %v1284_v2 = vld [vmem:[#allocation5 + $0x204] ss:$16 sps:$4 sm:$0xff]   ;;  %v1287_v3 = vld [vmem:[#allocation5 + $0x20c] ss:$16 sps:$4 sm:$0xff]   ;;  %v1282_v5 = vld [vmem:[#allocation5 + $0x200] ss:$16 sps:$4 sm:$0xff]  }
  0x3d   :  { %859 = vmatprep.subr.bf16.mxu0 %v1220_v24  ;;  %941 = vmatprep.subr.bf16.mxu1 %v1222_v25  ;;  %v1285_v6 = vld [vmem:[#allocation5 + $0x208] ss:$16 sps:$4 sm:$0xff]   ;;  %v1290_v7 = vld [vmem:[#allocation5 + $0x224] ss:$16 sps:$4 sm:$0xff]   ;;  %v1293_v8 = vld [vmem:[#allocation5 + $0x22c] ss:$16 sps:$4 sm:$0xff]  }
  0x3e   :  { %v1288_v9 = vld [vmem:[#allocation5 + $0x220] ss:$16 sps:$4 sm:$0xff]   ;;  %v1291_v10 = vld [vmem:[#allocation5 + $0x228] ss:$16 sps:$4 sm:$0xff]   ;;  %v1296_v11 = vld [vmem:[#allocation5 + $0x244] ss:$16 sps:$4 sm:$0xff]  }
  0x3f   :  { %v1299_v12 = vld [vmem:[#allocation5 + $0x24c] ss:$16 sps:$4 sm:$0xff]   ;;  %v1294_v13 = vld [vmem:[#allocation5 + $0x240] ss:$16 sps:$4 sm:$0xff]   ;;  %v1297_v14 = vld [vmem:[#allocation5 + $0x248] ss:$16 sps:$4 sm:$0xff]  }
  0x40   :  { %860 = vmatpush1.bf16.msra.mxu0 %v1224_v26  ;;  %942 = vmatpush1.bf16.msra.mxu1 %v1225_v27  ;;  %v1302_v15 = vld [vmem:[#allocation5 + $0x264] ss:$16 sps:$4 sm:$0xff]   ;;  %v1305_v16 = vld [vmem:[#allocation5 + $0x26c] ss:$16 sps:$4 sm:$0xff]   ;;  %v1300_v17 = vld [vmem:[#allocation5 + $0x260] ss:$16 sps:$4 sm:$0xff]  }
  0x41   :  { %861 = vmatprep.subr.bf16.mxu0 %v1226_v28  ;;  %943 = vmatprep.subr.bf16.mxu1 %v1228_v29  ;;  %v1303_v18 = vld [vmem:[#allocation5 + $0x268] ss:$16 sps:$4 sm:$0xff]   ;;  %v1308_v19 = vld [vmem:[#allocation5 + $0x284] ss:$16 sps:$4 sm:$0xff]   ;;  %v1311_v20 = vld [vmem:[#allocation5 + $0x28c] ss:$16 sps:$4 sm:$0xff]  }
  0x42   :  { %v1306_v21 = vld [vmem:[#allocation5 + $0x280] ss:$16 sps:$4 sm:$0xff]   ;;  %v1309_v22 = vld [vmem:[#allocation5 + $0x288] ss:$16 sps:$4 sm:$0xff]   ;;  %v1314_v23 = vld [vmem:[#allocation5 + $0x2a4] ss:$16 sps:$4 sm:$0xff]  }
  0x43   :  { %v1317_v24 = vld [vmem:[#allocation5 + $0x2ac] ss:$16 sps:$4 sm:$0xff]   ;;  %v1312_v25 = vld [vmem:[#allocation5 + $0x2a0] ss:$16 sps:$4 sm:$0xff]   ;;  %v1315_v26 = vld [vmem:[#allocation5 + $0x2a8] ss:$16 sps:$4 sm:$0xff]  }
  0x44   :  { %862 = vmatpush1.bf16.msra.mxu0 %v1230_v30  ;;  %944 = vmatpush1.bf16.msra.mxu1 %v1231_v31  ;;  %v1320_v27 = vld [vmem:[#allocation5 + $0x2c4] ss:$16 sps:$4 sm:$0xff]   ;;  %v1323_v28 = vld [vmem:[#allocation5 + $0x2cc] ss:$16 sps:$4 sm:$0xff]   ;;  %v1318_v31 = vld [vmem:[#allocation5 + $0x2c0] ss:$16 sps:$4 sm:$0xff]  }
  0x45   :  { %863 = vmatprep.subr.bf16.mxu0 %v1232_v32  ;;  %945 = vmatprep.subr.bf16.mxu1 %v1234_v33  ;;  %v1516_v29 = vld [vmem:[#allocation2 + $0x8] sm:$0xff]  ;;  %v1326_v33 = vld [vmem:[#allocation5 + $0x2e4] ss:$16 sps:$4 sm:$0xff]  }
  0x46   :  { %v1038_v30 = vcombine.high %v1516_v29, %v1516_v29  ;;  %v1321_v32 = vld [vmem:[#allocation5 + $0x2c8] ss:$16 sps:$4 sm:$0xff]   ;;  %v1347_v46 = vld [vmem:[#allocation5 + $0x34c] ss:$16 sps:$4 sm:$0xff]  }
  0x47   :  { %v1345_v48 = vld [vmem:[#allocation5 + $0x348] ss:$16 sps:$4 sm:$0xff]  }
  0x48   :  { %864 = vmatpush1.bf16.msra.mxu0 %v1236_v34  ;;  %946 = vmatpush1.bf16.msra.mxu1 %v1237_v35  ;;  %v1329_v34 = vld [vmem:[#allocation5 + $0x2ec] ss:$16 sps:$4 sm:$0xff]   ;;  %v1324_v35 = vld [vmem:[#allocation5 + $0x2e0] ss:$16 sps:$4 sm:$0xff]  }
  0x49   :  { %865 = vmatprep.subr.bf16.mxu0 %v1238_v36  ;;  %947 = vmatprep.subr.bf16.mxu1 %v1240_v37  ;;  %v1327_v36 = vld [vmem:[#allocation5 + $0x2e8] ss:$16 sps:$4 sm:$0xff]   ;;  %v1332_v37 = vld [vmem:[#allocation5 + $0x304] ss:$16 sps:$4 sm:$0xff]  }
  0x4c   :  { %866 = vmatpush1.bf16.msra.mxu0 %v1242_v38  ;;  %948 = vmatpush1.bf16.msra.mxu1 %v1243_v39  ;;  %v1335_v38 = vld [vmem:[#allocation5 + $0x30c] ss:$16 sps:$4 sm:$0xff]   ;;  %v1330_v39 = vld [vmem:[#allocation5 + $0x300] ss:$16 sps:$4 sm:$0xff]  }
  0x4d   :  { %867 = vmatprep.subr.bf16.mxu0 %v1244_v40  ;;  %949 = vmatprep.subr.bf16.mxu1 %v1246_v41  ;;  %v1333_v40 = vld [vmem:[#allocation5 + $0x308] ss:$16 sps:$4 sm:$0xff]   ;;  %v1338_v41 = vld [vmem:[#allocation5 + $0x324] ss:$16 sps:$4 sm:$0xff]  }
  0x50   :  { %868 = vmatpush1.bf16.msra.mxu0 %v1248_v42  ;;  %950 = vmatpush1.bf16.msra.mxu1 %v1249_v43  ;;  %v1341_v42 = vld [vmem:[#allocation5 + $0x32c] ss:$16 sps:$4 sm:$0xff]   ;;  %v1336_v43 = vld [vmem:[#allocation5 + $0x320] ss:$16 sps:$4 sm:$0xff]  }
  0x51   :  { %869 = vmatprep.subr.bf16.mxu0 %v1250_v44  ;;  %951 = vmatprep.subr.bf16.mxu1 %v1252_v45  ;;  %v1339_v44 = vld [vmem:[#allocation5 + $0x328] ss:$16 sps:$4 sm:$0xff]   ;;  %v1344_v45 = vld [vmem:[#allocation5 + $0x344] ss:$16 sps:$4 sm:$0xff]  }
  0x54   :  { %870 = vmatpush1.bf16.msra.mxu0 %v1254_v47  ;;  %952 = vmatpush1.bf16.msra.mxu1 %v1255_v49  ;;  %v1342_v47 = vld [vmem:[#allocation5 + $0x340] ss:$16 sps:$4 sm:$0xff]   ;;  %v1350_v49 = vld [vmem:[#allocation5 + $0x364] ss:$16 sps:$4 sm:$0xff]  }
  0x55   :  { %871 = vmatprep.subr.bf16.mxu0 %v1256_v50  ;;  %953 = vmatprep.subr.bf16.mxu1 %v1258_v51  ;;  %v1353_v50 = vld [vmem:[#allocation5 + $0x36c] ss:$16 sps:$4 sm:$0xff]   ;;  %v1348_v51 = vld [vmem:[#allocation5 + $0x360] ss:$16 sps:$4 sm:$0xff]  }
  0x58   :  { %872 = vmatpush1.bf16.msra.mxu0 %v1260_v52  ;;  %954 = vmatpush1.bf16.msra.mxu1 %v1261_v53  ;;  %v1351_v52 = vld [vmem:[#allocation5 + $0x368] ss:$16 sps:$4 sm:$0xff]   ;;  %v1356_v53 = vld [vmem:[#allocation5 + $0x384] ss:$16 sps:$4 sm:$0xff]  }
  0x59   :  { %873 = vmatprep.subr.bf16.mxu0 %v1262_v54  ;;  %955 = vmatprep.subr.bf16.mxu1 %v1264_v55  ;;  %v1359_v54 = vld [vmem:[#allocation5 + $0x38c] ss:$16 sps:$4 sm:$0xff]   ;;  %v1354_v55 = vld [vmem:[#allocation5 + $0x380] ss:$16 sps:$4 sm:$0xff]  }
  0x5c   :  { %874 = vmatpush1.bf16.msra.mxu0 %v1266_v56  ;;  %956 = vmatpush1.bf16.msra.mxu1 %v1267_v57  ;;  %v1357_v56 = vld [vmem:[#allocation5 + $0x388] ss:$16 sps:$4 sm:$0xff]   ;;  %v1362_v57 = vld [vmem:[#allocation5 + $0x3a4] ss:$16 sps:$4 sm:$0xff]  }
  0x5d   :  { %875 = vmatprep.subr.bf16.mxu0 %v1268_v58  ;;  %957 = vmatprep.subr.bf16.mxu1 %v1270_v59  ;;  %v1365_v58 = vld [vmem:[#allocation5 + $0x3ac] ss:$16 sps:$4 sm:$0xff]   ;;  %v1360_v59 = vld [vmem:[#allocation5 + $0x3a0] ss:$16 sps:$4 sm:$0xff]  }
  0x60   :  { %876 = vmatpush1.bf16.msra.mxu0 %v1272_v60  ;;  %958 = vmatpush1.bf16.msra.mxu1 %v1273_v61  ;;  %v1363_v60 = vld [vmem:[#allocation5 + $0x3a8] ss:$16 sps:$4 sm:$0xff]   ;;  %v1368_v61 = vld [vmem:[#allocation5 + $0x3c4] ss:$16 sps:$4 sm:$0xff]  }
  0x61   :  { %877 = vmatprep.subr.bf16.mxu0 %v1274_v62  ;;  %959 = vmatprep.subr.bf16.mxu1 %v1276_v63  ;;  %v1371_v62 = vld [vmem:[#allocation5 + $0x3cc] ss:$16 sps:$4 sm:$0xff]   ;;  %v1366_v63 = vld [vmem:[#allocation5 + $0x3c0] ss:$16 sps:$4 sm:$0xff]  }
  0x64   :  { %878 = vmatpush1.bf16.msra.mxu0 %v1278_v0  ;;  %960 = vmatpush1.bf16.msra.mxu1 %v1279_v1  ;;  %v1369_v0 = vld [vmem:[#allocation5 + $0x3c8] ss:$16 sps:$4 sm:$0xff]   ;;  %v1374_v1 = vld [vmem:[#allocation5 + $0x3e4] ss:$16 sps:$4 sm:$0xff]  }
  0x65   :  { %888 = vmatprep.subr.bf16.mxu0 %v1284_v2  ;;  %970 = vmatprep.subr.bf16.mxu1 %v1287_v3  ;;  %v1377_v2 = vld [vmem:[#allocation5 + $0x3ec] ss:$16 sps:$4 sm:$0xff]   ;;  %v1372_v3 = vld [vmem:[#allocation5 + $0x3e0] ss:$16 sps:$4 sm:$0xff]  }
  0x67   :  { %880 = vmatmul.mubr.bf16.vlgmr.msra.gmra.mrb[0].mxu0 %v1035_v4  ;;  %962 = vmatmul.mubr.bf16.vlgmr.msra.gmra.mrb[0].mxu1 %v1035_v4  ;;  %v1375_v4 = vld [vmem:[#allocation5 + $0x3e8] ss:$16 sps:$4 sm:$0xff]  }
  0x68   :  { %889 = vmatpush1.bf16.msra.mxu0 %v1282_v5  ;;  %971 = vmatpush1.bf16.msra.mxu1 %v1285_v6  ;;  %v1037_v5 = vcombine.low %v1516_v29, %v1516_v29  ;;  %v173_v6 = vlaneseq }
  0x69   :  { %890 = vmatprep.subr.bf16.mxu0 %v1290_v7  ;;  %972 = vmatprep.subr.bf16.mxu1 %v1293_v8 }
  0x6a   :  { %920 = vmatprep.mubr.bf16.mxu0 %v1038_v30  ;;  %1002 = vmatprep.mubr.bf16.mxu1 %v1038_v30  ;;  %v174_v7 = vshrl.u32 %v173_v6, 7 }
  0x6c   :  { %891 = vmatpush1.bf16.msra.mxu0 %v1288_v9  ;;  %973 = vmatpush1.bf16.msra.mxu1 %v1291_v10  ;;  %v175_v8 = vsub.s32 0, %v174_v7  ;;  %v183_v9 = vsub.s32 2, %v174_v7  ;;  %v171_v10 = vld [vmem:[%s1539_s2] sm:$0xf]  ;;  %s1464_s2 = smov [#allocation7]  }
  0x6d   :  { %892 = vmatprep.subr.bf16.mxu0 %v1296_v11  ;;  %974 = vmatprep.subr.bf16.mxu1 %v1299_v12  ;;  %v179_v11 = vsub.s32 1, %v174_v7  ;;  %v187_v12 = vsub.s32 3, %v174_v7  ;;  %s1025_s11 = sshll.u32 %s1464_s2, 4  ;;  %s1026_s11 = int_to_ptr.vmem [resolvable:$true] %s1025_s11 }
  0x6e   :  { %s1432_s12 = scalar_lea.vmem %s1026_s11, 512  ;;  %p1437_p3 = scmp.lt.s32.totalorder %s1026_s11, %s1026_s11 }
  0x6f   :  { %p1433_p2 = scmp.ne.s32.totalorder %s1026_s11, %s1432_s12  ;;  %p1438_p4 = scmp.lt.s32.totalorder %s1432_s12, %s1432_s12 }
  0x70   :  { %893 = vmatpush1.bf16.msra.mxu0 %v1294_v13  ;;  %975 = vmatpush1.bf16.msra.mxu1 %v1297_v14  ;;  %v176_v13 = vrot.slane %v171_v10, %v175_v8  ;;  %v184_v14 = vrot.slane %v171_v10, %v183_v9 }
  0x71   :  { %894 = vmatprep.subr.bf16.mxu0 %v1302_v15  ;;  %976 = vmatprep.subr.bf16.mxu1 %v1305_v16  ;;  %v180_v15 = vrot.slane %v171_v10, %v179_v11  ;;  %v188_v16 = vrot.slane %v171_v10, %v187_v12  ;;  %p1439_p5 = por %p1438_p4, %p1437_p3 }
  0x73   :  { %p1440_p6 = pnand %p1439_p5, %p1433_p2 }
  0x74   :  { %895 = vmatpush1.bf16.msra.mxu0 %v1300_v17  ;;  %977 = vmatpush1.bf16.msra.mxu1 %v1303_v18 }
  0x75   :  { %896 = vmatprep.subr.bf16.mxu0 %v1308_v19  ;;  %978 = vmatprep.subr.bf16.mxu1 %v1311_v20 }
  0x78   :  { %897 = vmatpush1.bf16.msra.mxu0 %v1306_v21  ;;  %979 = vmatpush1.bf16.msra.mxu1 %v1309_v22 }
  0x79   :  { %898 = vmatprep.subr.bf16.mxu0 %v1314_v23  ;;  %980 = vmatprep.subr.bf16.mxu1 %v1317_v24 }
  0x7c   :  { %899 = vmatpush1.bf16.msra.mxu0 %v1312_v25  ;;  %981 = vmatpush1.bf16.msra.mxu1 %v1315_v26 }
  0x7d   :  { %900 = vmatprep.subr.bf16.mxu0 %v1320_v27  ;;  %982 = vmatprep.subr.bf16.mxu1 %v1323_v28 }
  0x80   :  { %901 = vmatpush1.bf16.msra.mxu0 %v1318_v31  ;;  %983 = vmatpush1.bf16.msra.mxu1 %v1321_v32 }
  0x81   :  { %902 = vmatprep.subr.bf16.mxu0 %v1326_v33  ;;  %984 = vmatprep.subr.bf16.mxu1 %v1329_v34 }
  0x84   :  { %903 = vmatpush1.bf16.msra.mxu0 %v1324_v35  ;;  %985 = vmatpush1.bf16.msra.mxu1 %v1327_v36 }
  0x85   :  { %904 = vmatprep.subr.bf16.mxu0 %v1332_v37  ;;  %986 = vmatprep.subr.bf16.mxu1 %v1335_v38 }
  0x88   :  { %905 = vmatpush1.bf16.msra.mxu0 %v1330_v39  ;;  %987 = vmatpush1.bf16.msra.mxu1 %v1333_v40 }
  0x89   :  { %906 = vmatprep.subr.bf16.mxu0 %v1338_v41  ;;  %988 = vmatprep.subr.bf16.mxu1 %v1341_v42 }
  0x8c   :  { %907 = vmatpush1.bf16.msra.mxu0 %v1336_v43  ;;  %989 = vmatpush1.bf16.msra.mxu1 %v1339_v44 }
  0x8d   :  { %908 = vmatprep.subr.bf16.mxu0 %v1344_v45  ;;  %990 = vmatprep.subr.bf16.mxu1 %v1347_v46 }
  0x90   :  { %909 = vmatpush1.bf16.msra.mxu0 %v1342_v47  ;;  %991 = vmatpush1.bf16.msra.mxu1 %v1345_v48 }
  0x91   :  { %910 = vmatprep.subr.bf16.mxu0 %v1350_v49  ;;  %992 = vmatprep.subr.bf16.mxu1 %v1353_v50 }
  0x94   :  { %911 = vmatpush1.bf16.msra.mxu0 %v1348_v51  ;;  %993 = vmatpush1.bf16.msra.mxu1 %v1351_v52 }
  0x95   :  { %912 = vmatprep.subr.bf16.mxu0 %v1356_v53  ;;  %994 = vmatprep.subr.bf16.mxu1 %v1359_v54 }
  0x98   :  { %913 = vmatpush1.bf16.msra.mxu0 %v1354_v55  ;;  %995 = vmatpush1.bf16.msra.mxu1 %v1357_v56 }
  0x99   :  { %914 = vmatprep.subr.bf16.mxu0 %v1362_v57  ;;  %996 = vmatprep.subr.bf16.mxu1 %v1365_v58 }
  0x9c   :  { %915 = vmatpush1.bf16.msra.mxu0 %v1360_v59  ;;  %997 = vmatpush1.bf16.msra.mxu1 %v1363_v60 }
  0x9d   :  { %916 = vmatprep.subr.bf16.mxu0 %v1368_v61  ;;  %998 = vmatprep.subr.bf16.mxu1 %v1371_v62 }
  0xa0   :  { %917 = vmatpush1.bf16.msra.mxu0 %v1366_v63  ;;  %999 = vmatpush1.bf16.msra.mxu1 %v1369_v0 }
  0xa1   :  { %918 = vmatprep.subr.bf16.mxu0 %v1374_v1  ;;  %1000 = vmatprep.subr.bf16.mxu1 %v1377_v2 }
  0xa4   :  { %919 = vmatpush1.bf16.msra.mxu0 %v1372_v3  ;;  %1001 = vmatpush1.bf16.msra.mxu1 %v1375_v4 }
  0xa7   :  { %921 = vmatmul.mubr.bf16.vlgmr.msra.gmra.mrb[0].mxu0 %v1037_v5  ;;  %1003 = vmatmul.mubr.bf16.vlgmr.msra.gmra.mrb[0].mxu1 %v1037_v5 }
 0x17a   :  { %v922_v17 = vpop.f32.mrb[0].mxu0  ;;  %v1004_v18 = vpop.f32.mrb[0].mxu1 }
 0x17b   :  { %v1167_v19 = vadd.f32 %v922_v17, %v176_v13  ;;  %v1169_v20 = vadd.f32 %v1004_v18, %v184_v14  ;;  %v924_v21 = vpop.f32.mrb[1].mxu0  ;;  %v1006_v22 = vpop.f32.mrb[1].mxu1 }
 0x17c   :  { %v1168_v23 = vadd.f32 %v924_v21, %v180_v15  ;;  %v1170_v24 = vadd.f32 %v1006_v22, %v188_v16  ;;  %v926_v25 = vpop.f32.mrb[2].mxu0  ;;  %v1008_v26 = vpop.f32.mrb[2].mxu1 }
 0x17d   :  { %1380 = vtanh.f32 %v1167_v19  ;;  %v927_v27 = vpop.f32.mrb[3].mxu0  ;;  %v1009_v28 = vpop.f32.mrb[3].mxu1 }
 0x17e   :  { %1382 = vtanh.f32 %v1169_v20 }
 0x17f   :  { %1384 = vtanh.f32 %v1168_v23 }
 0x180   :  { %1386 = vtanh.f32 %v1170_v24 }
 0x187   :  { %v1381_v29 = vpop.eup %1380 }
 0x188   :  { %v1383_v30 = vpop.eup %1382  ;;  %1015 = vst [vmem:[#allocation7] sm:$0xff] %v1381_v29 }
 0x189   :  { %v1385_v31 = vpop.eup %1384  ;;  %1017 = vst [vmem:[#allocation7 + $0x10] sm:$0xff] %v1383_v30 }
 0x18a   :  { %v1387_v32 = vpop.eup %1386  ;;  %1016 = vst [vmem:[#allocation7 + $0x8] sm:$0xff] %v1385_v31 }
 0x18b   :  { %1018 = vst [vmem:[#allocation7 + $0x18] sm:$0xff] %v1387_v32 }
 0x18c   :  { %1443 = shalt.err (!%p1440_p6)
}
 0x18d   :  { %s1444_s15 = scalar_lea.hbm %s1540_s3, 512 }
 0x18e   :  { %p1445_p7 = scmp.ne.s32.totalorder %s1540_s3, %s1444_s15  ;;  %p1448_p8 = scmp.lt.u32.totalorder %s1444_s15, %s1540_s3 }
 0x190   :  { %p1450_p9 = pnand %p1448_p8, %p1445_p7 }
 0x192   :  { %1453 = shalt.err (!%p1450_p9)
}
 0x193   :  { %1028 = dma.vmem_to_hbm [thread:$0]  %s1026_s11, 512, %s1540_s3, [#allocation4]  }
 0x194   :  { %1458 = dma.done.wait [#allocation4], 512  }
 0x195   :  { %1459 = vsyncadd [#allocation4], 4294966784 }
 0x196   :  { %1032 = vsyncpa [#allocation3], 1 }
 0x197   :  { %1033 = vsyncpa [#allocation6], 1 }
 0x198   :  { %1034 = vsyncpa [#allocation4], 1 }

</bundles_post_ra>
